<compile_context>
chip_gen: v7x
topology: tpu7x:2x2x1
jax: 0.10.0
libtpu: 0.0.40
codegen_flags: <defaults>
</compile_context>

<pallas_src>
import jax
import jax.numpy as jnp
from jax.experimental import pallas as pl
from jax.experimental.pallas import tpu as pltpu


def decoder_kernel(x_ref, w0_ref, b0_ref, w1_ref, b1_ref, o_ref):
    # x_ref:  (TM, emb)      f32  (cast to bf16 in-kernel; VALU is idle here)
    # w0_ref: (emb, hidden)  bf16 (VMEM-resident across grid steps)
    # b0_ref: (1, hidden)    f32
    # w1_ref: (hidden, out)  bf16
    # b1_ref: (1, out)       f32
    # o_ref:  (TM, out)      bf16 (narrow store: masked lanes, but 16x less HBM)
    x = x_ref[...].astype(jnp.bfloat16)
    h = jnp.dot(x, w0_ref[...], preferred_element_type=jnp.float32) + b0_ref[...]
    h = jnp.maximum(h, 0.0)                               # ReLU in f32 (VPU)
    z = jnp.dot(h.astype(jnp.bfloat16), w1_ref[...],
                preferred_element_type=jnp.float32) + b1_ref[...]
    # sigmoid(z) = 1 / (1 + exp(-z)); exp + approx reciprocal both land on EUP.
    o_ref[...] = pl.reciprocal(1.0 + jnp.exp(-z), approx=True).astype(o_ref.dtype)


def _round_up(a, m):
    return ((a + m - 1) // m) * m


def _choose_tm(B, block_m):
    """Batch-tile size.

    - Tiny batches: one grid step with tile == B (block == full array dim is
      always a legal layout regardless of B).
    - Larger batches: multiple of 256 (MXU/bf16-sublane friendly), capped by
      block_m, sized so the grid has >=2 steps (v7x megacore sharding)."""
    if B <= 256:
        return B
    return min(block_m, _round_up(pl.cdiv(B, 2), 256))


def decoder_forward(x, w0, b0, w1, b1, *, block_m=2048):
    """x: [B, emb] f32, w0: [emb, hidden], b0: [1, hidden],
       w1: [hidden, out], b1: [1, out]  ->  [B, out] bf16."""
    B, emb = x.shape
    hidden = w0.shape[1]
    out = w1.shape[1]

    tm = _choose_tm(B, block_m)
    grid = (pl.cdiv(B, tm),)          # partial last block is masked by Pallas

    w0_b = w0.astype(jnp.bfloat16)    # tiny one-time casts; weights stay resident
    b0_f = b0.astype(jnp.float32)
    w1_b = w1.astype(jnp.bfloat16)
    b1_f = b1.astype(jnp.float32)

    return pl.pallas_call(
        decoder_kernel,
        out_shape=jax.ShapeDtypeStruct((B, out), jnp.bfloat16),
        grid_spec=pltpu.PrefetchScalarGridSpec(
            num_scalar_prefetch=0,
            grid=grid,
            in_specs=[
                pl.BlockSpec((tm, emb), lambda i: (i, 0)),      # x tiles stream
                pl.BlockSpec((emb, hidden), lambda i: (0, 0)),  # weights stay put
                pl.BlockSpec((1, hidden), lambda i: (0, 0)),
                pl.BlockSpec((hidden, out), lambda i: (0, 0)),
                pl.BlockSpec((1, out), lambda i: (0, 0)),
            ],
            out_specs=pl.BlockSpec((tm, out), lambda i: (i, 0)),
        ),
        compiler_params=pltpu.CompilerParams(
            dimension_semantics=("parallel",),   # megacore-shard the batch (v7x)
        ),
    )(x.astype(jnp.float32), w0_b, b0_f, w1_b, b1_f)


def init_params(key, emb_size, out_size, hidden_size=128):
    """Deterministic init mimicking nn.Linear (uniform +-1/sqrt(fan_in)).
    Weights stored as [in, out] (PyTorch weight transposed)."""
    k0w, k0b, k1w, k1b = jax.random.split(key, 4)
    lim0 = 1.0 / jnp.sqrt(emb_size)
    lim1 = 1.0 / jnp.sqrt(hidden_size)
    w0 = jax.random.uniform(k0w, (emb_size, hidden_size), jnp.float32, -lim0, lim0)
    b0 = jax.random.uniform(k0b, (1, hidden_size), jnp.float32, -lim0, lim0)
    w1 = jax.random.uniform(k1w, (hidden_size, out_size), jnp.float32, -lim1, lim1)
    b1 = jax.random.uniform(k1b, (1, out_size), jnp.float32, -lim1, lim1)
    return w0, b0, w1, b1


def _reference_bf16(x, w0, b0, w1, b1):
    """Mirror of the kernel's mixed precision (bf16 matmul inputs, f32 acc)."""
    h = jnp.dot(x.astype(jnp.bfloat16), w0.astype(jnp.bfloat16),
                preferred_element_type=jnp.float32) + b0
    h = jnp.maximum(h, 0.0)
    z = jnp.dot(h.astype(jnp.bfloat16), w1.astype(jnp.bfloat16),
                preferred_element_type=jnp.float32) + b1
    return jax.nn.sigmoid(z)


if __name__ == "__main__":
    emb_size, out_size, hidden_size = 32, 16, 128

    key = jax.random.PRNGKey(0)
    kx, kp, kx2 = jax.random.split(key, 3)
    w0, b0, w1, b1 = init_params(kp, emb_size, out_size, hidden_size)

    # --- small-batch path (single grid step, tile == B) ---
    batch = 8
    x = jax.random.normal(kx, (batch, emb_size), jnp.float32)
    y = decoder_forward(x, w0, b0, w1, b1)
    jax.block_until_ready(y)

    y32 = y.astype(jnp.float32)
    # Tight check vs. a reference mirroring the kernel's mixed precision
    # (bf16 matmuls, f32 elementwise); kernel output is bf16 (~2e-3 rounding).
    assert jnp.allclose(y32, _reference_bf16(x, w0, b0, w1, b1), atol=5e-3), \
        "mismatch vs bf16-matmul reference (small batch)"
    # Loose check vs. full-f32 PyTorch-equivalent math (eval mode: dropout is
    # unused in forward, so it is simply absent here).
    y_f32_ref = jax.nn.sigmoid(jnp.maximum(x @ w0 + b0, 0.0) @ w1 + b1)
    assert jnp.allclose(y32, y_f32_ref, atol=2e-2), \
        "mismatch vs f32 reference (small batch)"

    # --- multi-step grid with a partial (masked) last block ---
    batch2 = 600                     # tm=512 -> grid=(2,), last block 88 valid rows
    x2 = jax.random.normal(kx2, (batch2, emb_size), jnp.float32)
    y2 = decoder_forward(x2, w0, b0, w1, b1)
    jax.block_until_ready(y2)
    assert y2.shape == (batch2, out_size)
    assert jnp.allclose(y2.astype(jnp.float32),
                        _reference_bf16(x2, w0, b0, w1, b1), atol=5e-3), \
        "mismatch vs bf16-matmul reference (partial-block batch)"

    print("KERNEL_OK")
</pallas_src>

<mosaic_0001>
module attributes {stable_mosaic.version = 11 : i64} {
  func.func @decoder_kernel(%arg0: i32, %arg1: memref<8x32xf32, #tpu.memory_space<vmem>>, %arg2: memref<32x128xbf16, #tpu.memory_space<vmem>>, %arg3: memref<1x128xf32, #tpu.memory_space<vmem>>, %arg4: memref<128x16xbf16, #tpu.memory_space<vmem>>, %arg5: memref<1x16xf32, #tpu.memory_space<vmem>>, %arg6: memref<8x16xbf16, #tpu.memory_space<vmem>>) attributes {dimension_semantics = [#tpu.dimension_semantics<parallel>], iteration_bounds = array<i64: 1>, scalar_prefetch = 0 : i64, scratch_operands = 0 : i64, tpu.core_type = #tpu.core_type<tc>, window_params = [{transform_indices = @transform_0, window_bounds = array<i64: 8, 32>}, {pipeline_mode = #tpu.pipeline_mode<synchronous>, transform_indices = @transform_1, window_bounds = array<i64: 32, 128>}, {pipeline_mode = #tpu.pipeline_mode<synchronous>, transform_indices = @transform_2, window_bounds = array<i64: 1, 128>}, {pipeline_mode = #tpu.pipeline_mode<synchronous>, transform_indices = @transform_3, window_bounds = array<i64: 128, 16>}, {pipeline_mode = #tpu.pipeline_mode<synchronous>, transform_indices = @transform_4, window_bounds = array<i64: 1, 16>}, {transform_indices = @transform_5, window_bounds = array<i64: 8, 16>}]} {
    %c0 = arith.constant 0 : index
    %c0_0 = arith.constant 0 : index
    %0 = vector.load %arg1[%c0, %c0_0] : memref<8x32xf32, #tpu.memory_space<vmem>>, vector<8x32xf32>
    %1 = arith.truncf %0 : vector<8x32xf32> to vector<8x32xbf16>
    %c0_1 = arith.constant 0 : index
    %c0_2 = arith.constant 0 : index
    %2 = vector.load %arg2[%c0_1, %c0_2] : memref<32x128xbf16, #tpu.memory_space<vmem>>, vector<32x128xbf16>
    %cst = arith.constant dense<0.000000e+00> : vector<8x128xf32>
    %3 = tpu.matmul %1, %2, %cst {dimension_numbers = #tpu.dot_dimension_numbers<[1], [0], [0], [1], [0, 0, 1, 1], [], []>} : vector<8x32xbf16>, vector<32x128xbf16>, vector<8x128xf32> -> vector<8x128xf32>
    %c0_3 = arith.constant 0 : index
    %c0_4 = arith.constant 0 : index
    %4 = vector.load %arg3[%c0_3, %c0_4] : memref<1x128xf32, #tpu.memory_space<vmem>>, vector<1x128xf32>
    %5 = vector.broadcast %4 : vector<1x128xf32> to vector<8x128xf32>
    %6 = arith.addf %3, %5 : vector<8x128xf32>
    %cst_5 = arith.constant 0.000000e+00 : f32
    %7 = vector.broadcast %cst_5 : f32 to vector<8x128xf32>
    %8 = arith.maximumf %6, %7 : vector<8x128xf32>
    %9 = arith.truncf %8 : vector<8x128xf32> to vector<8x128xbf16>
    %c0_6 = arith.constant 0 : index
    %c0_7 = arith.constant 0 : index
    %10 = vector.load %arg4[%c0_6, %c0_7] : memref<128x16xbf16, #tpu.memory_space<vmem>>, vector<128x16xbf16>
    %cst_8 = arith.constant dense<0.000000e+00> : vector<8x16xf32>
    %11 = tpu.matmul %9, %10, %cst_8 {dimension_numbers = #tpu.dot_dimension_numbers<[1], [0], [0], [1], [0, 0, 1, 1], [], []>} : vector<8x128xbf16>, vector<128x16xbf16>, vector<8x16xf32> -> vector<8x16xf32>
    %c0_9 = arith.constant 0 : index
    %c0_10 = arith.constant 0 : index
    %12 = vector.load %arg5[%c0_9, %c0_10] : memref<1x16xf32, #tpu.memory_space<vmem>>, vector<1x16xf32>
    %13 = vector.broadcast %12 : vector<1x16xf32> to vector<8x16xf32>
    %14 = arith.addf %11, %13 : vector<8x16xf32>
    %cst_11 = arith.constant 0.000000e+00 : f32
    %15 = vector.broadcast %cst_11 : f32 to vector<8x16xf32>
    %16 = arith.subf %15, %14 : vector<8x16xf32>
    %17 = math.exp %16 : vector<8x16xf32>
    %cst_12 = arith.constant 1.000000e+00 : f32
    %18 = vector.broadcast %cst_12 : f32 to vector<8x16xf32>
    %19 = arith.addf %18, %17 : vector<8x16xf32>
    %20 = tpu.reciprocal %19 {approx = true} : vector<8x16xf32> -> vector<8x16xf32>
    %21 = arith.truncf %20 : vector<8x16xf32> to vector<8x16xbf16>
    %c0_13 = arith.constant 0 : index
    %c0_14 = arith.constant 0 : index
    %22 = vector.load %arg6[%c0_13, %c0_14] : memref<8x16xbf16, #tpu.memory_space<vmem>>, vector<8x16xbf16>
    tpu.vector_store %arg6[%c0_13, %c0_14], %21 {strides = array<i32>} : memref<8x16xbf16, #tpu.memory_space<vmem>>, vector<8x16xbf16>,
    return
  }
  func.func @transform_0(%arg0: i32) -> (i32, i32) {
    %c0_i32 = arith.constant 0 : i32
    %c0_i32_0 = arith.constant 0 : i32
    return %arg0, %c0_i32 : i32, i32
  }
  func.func @transform_1(%arg0: i32) -> (i32, i32) {
    %c0_i32 = arith.constant 0 : i32
    %c0_i32_0 = arith.constant 0 : i32
    %c0_i32_1 = arith.constant 0 : i32
    return %c0_i32, %c0_i32_0 : i32, i32
  }
  func.func @transform_2(%arg0: i32) -> (i32, i32) {
    %c0_i32 = arith.constant 0 : i32
    %c0_i32_0 = arith.constant 0 : i32
    %c0_i32_1 = arith.constant 0 : i32
    return %c0_i32, %c0_i32_0 : i32, i32
  }
  func.func @transform_3(%arg0: i32) -> (i32, i32) {
    %c0_i32 = arith.constant 0 : i32
    %c0_i32_0 = arith.constant 0 : i32
    %c0_i32_1 = arith.constant 0 : i32
    return %c0_i32, %c0_i32_0 : i32, i32
  }
  func.func @transform_4(%arg0: i32) -> (i32, i32) {
    %c0_i32 = arith.constant 0 : i32
    %c0_i32_0 = arith.constant 0 : i32
    %c0_i32_1 = arith.constant 0 : i32
    return %c0_i32, %c0_i32_0 : i32, i32
  }
  func.func @transform_5(%arg0: i32) -> (i32, i32) {
    %c0_i32 = arith.constant 0 : i32
    %c0_i32_0 = arith.constant 0 : i32
    return %arg0, %c0_i32 : i32, i32
  }
}

</mosaic_0001>

<bundles_post_ra>
// kernel: tpu_custom_call.1
= control target key start
LH: loop header
LB: loop body
LE: loop exit
PB: predicated region body
PF: predicated region fallthrough
CT: control target
= control target key end

     0   :  { %v320_v1 = vmov 0.0   ;;  %vm321_vm0 = vmmov 0   ;;  %vm47_vm1 = vcmask 261120   ;;  %s404_s0 = inlined_call_operand.vmem [shape: f32[8,32], index: 0, kind: input, shape index: {}]   ;;  %s405_s1 = inlined_call_operand.vmem [shape: bf16[32,128], index: 1, kind: input, shape index: {}]   ;;  %s406_s2 = inlined_call_operand.vmem [shape: f32[1,128], index: 2, kind: input, shape index: {}]   ;;  %s407_s3 = inlined_call_operand.vmem [shape: bf16[128,16], index: 3, kind: input, shape index: {}]   ;;  %s408_s4 = inlined_call_operand.vmem [shape: f32[1,16], index: 4, kind: input, shape index: {}]   ;;  %s409_s5 = inlined_call_operand.hbm [shape: bf16[8,16], index: 5, kind: output, shape index: {}]  }
   0x1   :  { %v282_v0 = vld [vmem:[%s405_s1] sm:$0xff]   ;;  %251 = vmatprep.subr.bf16.mxu0 %v320_v1  ;;  %v283_v2 = vld [vmem:[%s405_s1 + $0x8] sm:$0xff]   ;;  %259 = vmatprep.subr.bf16.mxu1 %v320_v1  ;;  %v286_v7 = vld [vmem:[%s407_s3 + $0x10] sm:$0xff]  }
   0x2   :  { %252 = vmatpush3.bf16.msra.mxu0 %v282_v0  ;;  %255 = vmatprep.mubr.msk.bf16.mxu0 %vm321_vm0, %v320_v1  ;;  %v22_v3 = vld [vmem:[%s404_s0] sm:$0xff]  ;;  %v285_v6 = vld [vmem:[%s407_s3 + $0x8] sm:$0xff]  }
   0x3   :  { %253 = vmatprep.subr.bf16.mxu0 %v320_v1  ;;  %v284_v4 = vld [vmem:[%s407_s3] sm:$0xff]   ;;  %275 = vmatprep.mubr.msk.bf16.mxu1 %vm321_vm0, %v320_v1  ;;  %v23_v5 = vpack.c.bf16 %v22_v3, %v22_v3 }
   0x4   :  { %260 = vmatpush3.bf16.msra.mxu1 %v284_v4 }
   0x5   :  { %261 = vmatprep.subr.bf16.mxu1 %v320_v1 }
   0x6   :  { %254 = vmatpush3.bf16.msra.mxu0 %v283_v2 }
   0x8   :  { %262 = vmatpush3.bf16.msra.mxu1 %v285_v6 }
   0x9   :  { %256 = vmatmul.mubr.msk.bf16.vlgmr.msra.gmra.mrb[0].mxu0 %vm47_vm1, %v23_v5  ;;  %263 = vmatprep.subr.bf16.mxu1 %v320_v1 }
   0xa   :  { %10 = vsyncpa [#allocation3], 0  ;;  %v287_v8 = vld [vmem:[%s407_s3 + $0x18] sm:$0xff]   ;;  %v288_v9 = vld [vmem:[%s407_s3 + $0x20] sm:$0xff]   ;;  %vm210_vm2 = vcmask 125952  }
   0xb   :  { %v289_v10 = vld [vmem:[%s407_s3 + $0x28] sm:$0xff]   ;;  %v290_v11 = vld [vmem:[%s407_s3 + $0x30] sm:$0xff]   ;;  %v291_v12 = vld [vmem:[%s407_s3 + $0x38] sm:$0xff]  }
   0xc   :  { %264 = vmatpush3.bf16.msra.mxu1 %v286_v7  ;;  %v226_v13 = vld [vmem:[%s406_s2] ss:$0 sm:$0xff]  ;;  %s322_s2 = smov [#allocation2]  }
   0xd   :  { %265 = vmatprep.subr.bf16.mxu1 %v320_v1  ;;  %v230_v21 = vld [vmem:[%s408_s4] ss:$0 sm:$0xff]  ;;  %s218_s3 = sshll.u32 %s322_s2, 4  ;;  %s219_s3 = int_to_ptr.vmem [resolvable:$true] %s218_s3 }
   0xe   :  { %s296_s17 = scalar_lea.vmem %s219_s3, 64  ;;  %p301_p1 = scmp.lt.s32.totalorder %s219_s3, %s219_s3 }
   0xf   :  { %p297_p0 = scmp.ne.s32.totalorder %s219_s3, %s296_s17  ;;  %p302_p2 = scmp.lt.s32.totalorder %s296_s17, %s296_s17 }
  0x10   :  { %266 = vmatpush3.bf16.msra.mxu1 %v287_v8 }
  0x11   :  { %267 = vmatprep.subr.bf16.mxu1 %v320_v1  ;;  %p303_p3 = por %p302_p2, %p301_p1 }
  0x13   :  { %p304_p4 = pnand %p303_p3, %p297_p0 }
  0x14   :  { %268 = vmatpush3.bf16.msra.mxu1 %v288_v9 }
  0x15   :  { %269 = vmatprep.subr.bf16.mxu1 %v320_v1 }
  0x18   :  { %270 = vmatpush3.bf16.msra.mxu1 %v289_v10 }
  0x19   :  { %271 = vmatprep.subr.bf16.mxu1 %v320_v1 }
  0x1c   :  { %272 = vmatpush3.bf16.msra.mxu1 %v290_v11 }
  0x1d   :  { %273 = vmatprep.subr.bf16.mxu1 %v320_v1 }
  0x20   :  { %274 = vmatpush3.bf16.msra.mxu1 %v291_v12 }
  0xdc   :  { %v85_v14 = vpop.f32.mrb[0].mxu0 }
  0xdd   :  { %v86_v15 = vadd.f32 %v226_v13, %v85_v14  ;;  %v257_v16 = vpop.f32.mrb[1].mxu0 }
  0xde   :  { %v88_v17 = vpop.f32.mrb[2].mxu0 }
  0xdf   :  { %v91_v18 = vmax.f32 %v86_v15, 0.0  ;;  %v258_v19 = vpop.f32.mrb[3].mxu0 }
  0xe1   :  { %v92_v20 = vpack.c.bf16 %v91_v18, %v91_v18 }
  0xe3   :  { %276 = vmatmul.mubr.bf16.vlgmr.msra.gmra.mrb[0].mxu1 %v92_v20 }
 0x1b6   :  { %v198_v22 = vpop.f32.mrb[0].mxu1 }
 0x1b7   :  { %v199_v23 = vadd.f32 %v230_v21, %v198_v22  ;;  %v277_v24 = vpop.f32.mrb[1].mxu1 }
 0x1b8   :  { %v201_v25 = vpop.f32.mrb[2].mxu1 }
 0x1b9   :  { %v204_v26 = vsub.f32 0.0, %v199_v23  ;;  %v278_v27 = vpop.f32.mrb[3].mxu1 }
 0x1bb   :  { %v205_v28 = vmul.f32 1.442695, %v204_v26 }
 0x1bd   :  { %292 = vpow2.f32 %v205_v28 }
 0x1c7   :  { %v293_v29 = vpop.eup %292 }
 0x1c8   :  { %v207_v30 = vadd.f32 1.0, %v293_v29 }
 0x1ca   :  { %294 = vrcp.f32 %v207_v30 }
 0x1d4   :  { %v295_v31 = vpop.eup %294 }
 0x1d5   :  { %v209_v32 = vpack.c.bf16 %v295_v31, %v295_v31 }
 0x1d7   :  { %211 = vst.msk [vmem:[#allocation2] sm:$0xf] %vm210_vm2, %v209_v32 }
 0x1d8   :  { %307 = shalt.err (!%p304_p4)
}
 0x1d9   :  { %s308_s19 = scalar_lea.hbm %s409_s5, 64 }
 0x1da   :  { %p309_p5 = scmp.ne.s32.totalorder %s409_s5, %s308_s19  ;;  %p312_p6 = scmp.lt.u32.totalorder %s308_s19, %s409_s5 }
 0x1dc   :  { %p314_p7 = pnand %p312_p6, %p309_p5 }
 0x1de   :  { %317 = shalt.err (!%p314_p7)
}
 0x1df   :  { %221 = dma.vmem_to_hbm [thread:$0]  %s219_s3, 64, %s409_s5, [#allocation3]  }
 0x1e0   :  { %318 = dma.done.wait [#allocation3], 64  }
 0x1e1   :  { %319 = vsyncadd [#allocation3], 4294967232 }
 0x1e2   :  { %225 = vsyncpa [#allocation3], 1 }

</bundles_post_ra>
